<compile_context>
chip_gen: v5e
topology: v5e:2x2
jax: 0.10.0
libtpu: 0.0.40
codegen_flags: <defaults>
</compile_context>

<pallas_src>
import math

import jax
import jax.numpy as jnp
import numpy as np
from jax.experimental import pallas as pl
from jax.experimental.pallas import tpu as pltpu


# ----------------------------------------------------------------------------
# Pallas kernel: 3 matmuls, 2 input DMAs, 1 lane-dense output DMA.
#   x_ref : (B, 48)  = [visual flat 0:12 | auditory 12:32 | tactile 32:37 |
#                       biometric 37:42 | ones 42:43 | zero pad 43:48]
#   w_ref : (96,128) = rows 0:48  stage-1 weights (conv12 in cols 0:64,
#                                 folded sensor->heads in cols 64:128,
#                                 row 42 = biases via the ones column,
#                                 row 47 = decision bias, read as a sublane row)
#                      rows 48:64 vis->heads weights (cols 0:64)
#                      rows 64:96 decision weights  (cols 0:96, only 0:3 used)
#   out_ref:(B,128)  = [amygdala 0:16 | hippocampus 16:32 | decision 32:35 | 0]
# ----------------------------------------------------------------------------
def ai_brain_kernel(x_ref, w_ref, out_ref):
    x = x_ref[...]                                                  # (B, 48)

    # --- stage 1: conv positions + folded sensor encoders in ONE matmul ---
    y = jnp.dot(x, w_ref[0:48, :], preferred_element_type=jnp.float32)  # (B, 128)

    # visual path: maxpool over the 4 conv positions (bias already added), ReLU
    vis = jnp.maximum(jnp.maximum(y[:, 0:16], y[:, 16:32]),
                      jnp.maximum(y[:, 32:48], y[:, 48:64]))        # (B, 16)
    vis = jnp.maximum(vis, 0.0)

    # --- heads: vis contribution + (already computed) sensor contribution ---
    # heads = [decision-hidden 0:32 | amygdala 32:48 | hippocampus 48:64]
    heads = jnp.dot(vis, w_ref[48:64, 0:64],
                    preferred_element_type=jnp.float32) + y[:, 64:128]   # (B, 64)

    # --- decision MLP second layer (bias read as a sublane row of the slab) ---
    hid = jnp.maximum(heads[:, 0:32], 0.0)
    dec = (jnp.dot(hid, w_ref[64:96, 0:96],
                   preferred_element_type=jnp.float32) + w_ref[47:48, 0:96])  # (B, 96)

    # lane-dense packed output: [amy | hip | dec | zero pad]
    out_ref[...] = jnp.concatenate([heads[:, 32:64], dec], axis=-1)


# ----------------------------------------------------------------------------
# Host-side (one-time) parameter packing -> single (96,128) fp32 weight slab.
# Pure numpy, done once at init; NOT part of the per-call path.
# ----------------------------------------------------------------------------
def pack_params(params):
    p = {k: np.asarray(v, np.float64) for k, v in params.items()}  # fold in f64

    # Conv2d(3,16,k3,p1) on a 2x2 image: output position (i,j) uses input pixel
    # (h,w) with kernel tap (h-i+1, w-j+1) -> dense (12, 4*16) weight.
    conv_w = p["conv_w"]                                           # (16,3,3,3) OCHW
    w_conv = np.zeros((12, 64), np.float64)
    for pos, (i, j) in enumerate(((0, 0), (0, 1), (1, 0), (1, 1))):
        r = 0
        for c in range(3):
            for h in range(2):
                for w in range(2):
                    w_conv[r, pos * 16:(pos + 1) * 16] = conv_w[:, c, h - i + 1, w - j + 1]
                    r += 1

    # Column-concatenated head weights over the 48-dim combined input:
    # combined = [vis 0:16 | aud 16:32 | tac 32:40 | bio 40:48]
    w_heads = np.concatenate([p["wd1"], p["wam"], p["whc"]], axis=1)   # (48, 64)

    # Fold the (bias-free-activation) sensor encoders into the head weights.
    w_sens_fold = np.zeros((30, 64), np.float64)
    w_sens_fold[0:20] = p["wa"] @ w_heads[16:32]
    w_sens_fold[20:25] = p["wt"] @ w_heads[32:40]
    w_sens_fold[25:30] = p["wb"] @ w_heads[40:48]
    b_sens_fold = (p["ba"].reshape(16) @ w_heads[16:32]
                   + p["bt"].reshape(8) @ w_heads[32:40]
                   + p["bb"].reshape(8) @ w_heads[40:48])              # (64,)
    b_heads = np.concatenate([p["bd1"].reshape(32),
                              p["bam"].reshape(16),
                              p["bhc"].reshape(16)])                   # (64,)

    w_slab = np.zeros((96, 128), np.float64)
    w_slab[0:12, 0:64] = w_conv                          # conv-as-matmul
    w_slab[12:42, 64:128] = w_sens_fold                  # folded sensor -> heads
    w_slab[42, 0:64] = np.tile(p["bc"].reshape(16), 4)   # conv bias via ones col
    w_slab[42, 64:128] = b_sens_fold + b_heads           # folded head biases
    w_slab[47, 0:3] = p["bd2"].reshape(3)                # decision bias row
    w_slab[48:64, 0:64] = w_heads[0:16]                  # vis -> heads
    w_slab[64:96, 0:3] = p["wd2"]                        # decision layer 2

    return jnp.asarray(w_slab, jnp.float32)


# ----------------------------------------------------------------------------
# Jitted forward wrapper: pack activations, call pallas_call, unpack outputs.
# ----------------------------------------------------------------------------
@jax.jit
def ai_brain_forward(w_slab, visual, auditory, tactile, biometric):
    B = visual.shape[0]
    x = jnp.concatenate(
        [visual.reshape(B, 12).astype(jnp.float32),
         auditory.astype(jnp.float32),
         tactile.astype(jnp.float32),
         biometric.astype(jnp.float32),
         jnp.ones((B, 1), jnp.float32),
         jnp.zeros((B, 5), jnp.float32)],
        axis=-1)                                              # (B, 48)

    vmem = pl.BlockSpec(memory_space=pltpu.MemorySpace.VMEM)
    out = pl.pallas_call(
        ai_brain_kernel,
        out_shape=jax.ShapeDtypeStruct((B, 128), jnp.float32),
        in_specs=[vmem, vmem],
        out_specs=vmem,
    )(x, w_slab)

    # [amy 0:16 | hip 16:32 | dec 32:35]
    return out[:, 32:35], out[:, 0:16], out[:, 16:32]


# ----------------------------------------------------------------------------
# Deterministic parameter init (synthetic weights, (in, out) layout).
# ----------------------------------------------------------------------------
def make_params(key):
    ks = jax.random.split(key, 16)

    def rnd(k, shape, fan_in):
        return jax.random.normal(k, shape, jnp.float32) / math.sqrt(fan_in)

    return {
        "conv_w": rnd(ks[0], (16, 3, 3, 3), 27),  # PyTorch conv layout (O,C,kh,kw)
        "bc": rnd(ks[1], (1, 16), 27),
        "wa": rnd(ks[2], (20, 16), 20),  "ba": rnd(ks[3], (1, 16), 20),
        "wt": rnd(ks[4], (5, 8), 5),     "bt": rnd(ks[5], (1, 8), 5),
        "wb": rnd(ks[6], (5, 8), 5),     "bb": rnd(ks[7], (1, 8), 5),
        "wd1": rnd(ks[8], (48, 32), 48), "bd1": rnd(ks[9], (1, 32), 48),
        "wd2": rnd(ks[10], (32, 3), 32), "bd2": rnd(ks[11], (1, 3), 32),
        "wam": rnd(ks[12], (48, 16), 48), "bam": rnd(ks[13], (1, 16), 48),
        "whc": rnd(ks[14], (48, 16), 48), "bhc": rnd(ks[15], (1, 16), 48),
    }


# ----------------------------------------------------------------------------
# Pure-JAX reference (original layer-by-layer semantics) for correctness check.
# ----------------------------------------------------------------------------
def ai_brain_reference(params, visual, auditory, tactile, biometric):
    B = visual.shape[0]
    wc = params["conv_w"].reshape(16, 27).T                       # (27, 16)
    vp = jnp.pad(visual, ((0, 0), (0, 0), (1, 1), (1, 1)))
    patches = []
    for i in range(2):
        for j in range(2):
            patches.append(vp[:, :, i:i + 3, j:j + 3].reshape(B, 27))
    xcol = jnp.stack(patches, axis=0)                             # (4, B, 27)
    conv = jnp.maximum(jnp.einsum("pbk,ko->pbo", xcol, wc) + params["bc"], 0.0)
    vis = conv.max(axis=0)                                        # (B, 16)
    aud = auditory @ params["wa"] + params["ba"]
    tac = tactile @ params["wt"] + params["bt"]
    bio = biometric @ params["wb"] + params["bb"]
    comb = jnp.concatenate([vis, aud, tac, bio], axis=1)          # (B, 48)
    hid = jnp.maximum(comb @ params["wd1"] + params["bd1"], 0.0)
    dec = hid @ params["wd2"] + params["bd2"]
    amy = comb @ params["wam"] + params["bam"]
    hip = comb @ params["whc"] + params["bhc"]
    return dec, amy, hip


if __name__ == "__main__":
    B = 2
    key = jax.random.PRNGKey(0)
    k_par, k_vis, k_aud, k_tac, k_bio = jax.random.split(key, 5)

    params = make_params(k_par)
    w_slab = pack_params(params)        # one-time host-side packing (hoisted)

    # Spatial 2x2 is implied by decision_layer in_features=48 (16*1*1 + 16 + 8 + 8).
    visual = jax.random.normal(k_vis, (B, 3, 2, 2), jnp.float32)   # NCHW
    auditory = jax.random.normal(k_aud, (B, 20), jnp.float32)
    tactile = jax.random.normal(k_tac, (B, 5), jnp.float32)
    biometric = jax.random.normal(k_bio, (B, 5), jnp.float32)

    dec, amy, hip = ai_brain_forward(w_slab, visual, auditory, tactile, biometric)
    jax.block_until_ready((dec, amy, hip))

    dec_r, amy_r, hip_r = ai_brain_reference(params, visual, auditory, tactile, biometric)
    assert dec.shape == (B, 3) and amy.shape == (B, 16) and hip.shape == (B, 16)
    np.testing.assert_allclose(np.asarray(dec), np.asarray(dec_r), rtol=1e-4, atol=1e-4)
    np.testing.assert_allclose(np.asarray(amy), np.asarray(amy_r), rtol=1e-4, atol=1e-4)
    np.testing.assert_allclose(np.asarray(hip), np.asarray(hip_r), rtol=1e-4, atol=1e-4)

    print("KERNEL_OK")
</pallas_src>

<mosaic_0001>
module attributes {stable_mosaic.version = 11 : i64} {
  func.func @ai_brain_kernel(%arg0: memref<2x48xf32, #tpu.memory_space<vmem>>, %arg1: memref<96x128xf32, #tpu.memory_space<vmem>>, %arg2: memref<2x128xf32, #tpu.memory_space<vmem>>) attributes {dimension_semantics = [], scalar_prefetch = 0 : i64, scratch_operands = 0 : i64, tpu.core_type = #tpu.core_type<tc>} {
    %c0 = arith.constant 0 : index
    %c0_0 = arith.constant 0 : index
    %0 = vector.load %arg0[%c0, %c0_0] : memref<2x48xf32, #tpu.memory_space<vmem>>, vector<2x48xf32>
    %c0_1 = arith.constant 0 : index
    %c0_2 = arith.constant 0 : index
    %1 = vector.load %arg1[%c0_1, %c0_2] : memref<96x128xf32, #tpu.memory_space<vmem>>, vector<48x128xf32>
    %cst = arith.constant dense<0.000000e+00> : vector<2x128xf32>
    %2 = tpu.matmul %0, %1, %cst {dimension_numbers = #tpu.dot_dimension_numbers<[1], [0], [0], [1], [0, 0, 1, 1], [], []>} : vector<2x48xf32>, vector<48x128xf32>, vector<2x128xf32> -> vector<2x128xf32>
    %3 = vector.extract_strided_slice %2 {offsets = [0, 0], sizes = [2, 16], strides = [1, 1]} : vector<2x128xf32> to vector<2x16xf32>
    %4 = vector.extract_strided_slice %2 {offsets = [0, 16], sizes = [2, 16], strides = [1, 1]} : vector<2x128xf32> to vector<2x16xf32>
    %5 = arith.maximumf %3, %4 : vector<2x16xf32>
    %6 = vector.extract_strided_slice %2 {offsets = [0, 32], sizes = [2, 16], strides = [1, 1]} : vector<2x128xf32> to vector<2x16xf32>
    %7 = vector.extract_strided_slice %2 {offsets = [0, 48], sizes = [2, 16], strides = [1, 1]} : vector<2x128xf32> to vector<2x16xf32>
    %8 = arith.maximumf %6, %7 : vector<2x16xf32>
    %9 = arith.maximumf %5, %8 : vector<2x16xf32>
    %cst_3 = arith.constant 0.000000e+00 : f32
    %10 = vector.broadcast %cst_3 : f32 to vector<2x16xf32>
    %11 = arith.maximumf %9, %10 : vector<2x16xf32>
    %c48 = arith.constant 48 : index
    %c0_4 = arith.constant 0 : index
    %12 = vector.load %arg1[%c48, %c0_4] : memref<96x128xf32, #tpu.memory_space<vmem>>, vector<16x64xf32>
    %cst_5 = arith.constant dense<0.000000e+00> : vector<2x64xf32>
    %13 = tpu.matmul %11, %12, %cst_5 {dimension_numbers = #tpu.dot_dimension_numbers<[1], [0], [0], [1], [0, 0, 1, 1], [], []>} : vector<2x16xf32>, vector<16x64xf32>, vector<2x64xf32> -> vector<2x64xf32>
    %14 = vector.extract_strided_slice %2 {offsets = [0, 64], sizes = [2, 64], strides = [1, 1]} : vector<2x128xf32> to vector<2x64xf32>
    %15 = arith.addf %13, %14 : vector<2x64xf32>
    %16 = vector.extract_strided_slice %15 {offsets = [0, 0], sizes = [2, 32], strides = [1, 1]} : vector<2x64xf32> to vector<2x32xf32>
    %cst_6 = arith.constant 0.000000e+00 : f32
    %17 = vector.broadcast %cst_6 : f32 to vector<2x32xf32>
    %18 = arith.maximumf %16, %17 : vector<2x32xf32>
    %c64 = arith.constant 64 : index
    %c0_7 = arith.constant 0 : index
    %19 = vector.load %arg1[%c64, %c0_7] : memref<96x128xf32, #tpu.memory_space<vmem>>, vector<32x96xf32>
    %cst_8 = arith.constant dense<0.000000e+00> : vector<2x96xf32>
    %20 = tpu.matmul %18, %19, %cst_8 {dimension_numbers = #tpu.dot_dimension_numbers<[1], [0], [0], [1], [0, 0, 1, 1], [], []>} : vector<2x32xf32>, vector<32x96xf32>, vector<2x96xf32> -> vector<2x96xf32>
    %c47 = arith.constant 47 : index
    %c0_9 = arith.constant 0 : index
    %21 = vector.load %arg1[%c47, %c0_9] : memref<96x128xf32, #tpu.memory_space<vmem>>, vector<1x96xf32>
    %22 = vector.broadcast %21 : vector<1x96xf32> to vector<2x96xf32>
    %23 = arith.addf %20, %22 : vector<2x96xf32>
    %24 = vector.extract_strided_slice %15 {offsets = [0, 32], sizes = [2, 32], strides = [1, 1]} : vector<2x64xf32> to vector<2x32xf32>
    %25 = tpu.concatenate %24, %23 in 1 : vector<2x32xf32>, vector<2x96xf32> -> vector<2x128xf32>
    %c0_10 = arith.constant 0 : index
    %c0_11 = arith.constant 0 : index
    %26 = vector.load %arg2[%c0_10, %c0_11] : memref<2x128xf32, #tpu.memory_space<vmem>>, vector<2x128xf32>
    tpu.vector_store %arg2[%c0_10, %c0_11], %25 {strides = array<i32>} : memref<2x128xf32, #tpu.memory_space<vmem>>, vector<2x128xf32>,
    return
  }
}

</mosaic_0001>

<bundles_post_ra>
// kernel: ai_brain_forward.1
= control target key start
LH: loop header
LB: loop body
LE: loop exit
PB: predicated region body
PF: predicated region fallthrough
CT: control target
= control target key end

     0   :  { %7 = vsyncpa [#allocation3], 0  ;;  %s181_s12 = smov [#allocation2]   ;;  %s182_s14 = smov 128   ;;  %s212_s0 = inlined_call_operand.vmem [shape: f32[2,48], index: 0, kind: input, shape index: {}]   ;;  %s213_s1 = inlined_call_operand.hbm [shape: f32[96,128], index: 1, kind: input, shape index: {}]   ;;  %s214_s2 = inlined_call_operand.vmem [shape: f32[2,128], index: 2, kind: output, shape index: {}]  }
   0x1   :  { %s14_s11 = sshll.u32 %s213_s1, 4  ;;  %s16_s13 = sshll.u32 %s181_s12, 4  ;;  %s15_s11 = int_to_ptr.hbm [resolvable:$true] %s14_s11  ;;  %s17_s13 = int_to_ptr.vmem [resolvable:$true] %s16_s13 }
   0x2   :  { %s183_s15 = smov 8  }
   0x3   :  { %22 = dma.hbm_to_vmem [thread:$0]  %s15_s11, 1536, %s17_s13, [#allocation3], %s182_s14, %s182_s14, %s183_s15  }
   0x4   :  { %179 = dma.done.wait [#allocation3], 1536  }
   0x5   :  { %180 = vsyncadd [#allocation3], 4294965760  ;;  %v33_v0 = vld [vmem:[#allocation2 + $0x28] sm:$0xff]  ;;  %v32_v1 = vld [vmem:[#allocation2 + $0x20] sm:$0xff]  ;;  %vm34_vm0 = vcmask 392192   ;;  %s184_s17 = smov 64  }
   0x6   :  { %48 = vmatpush.msra.mxu0 %v33_v0  ;;  %v31_v2 = vld [vmem:[#allocation2 + $0x18] sm:$0xff]  ;;  %v30_v3 = vld [vmem:[#allocation2 + $0x10] sm:$0xff]  ;;  %v29_v4 = vld [vmem:[#allocation2 + $0x8] sm:$0xff]  ;;  %s185_s18 = smov 112   ;;  %s186_s19 = smov 96   ;;  %vm74_vm1 = vcmask 130048  }
   0x7   :  { %v28_v5 = vld [vmem:[#allocation2] sm:$0xff]  ;;  %v70_v10 = vld [vmem:[#allocation2 + $0x38] sm:$0xff]  ;;  %v69_v11 = vld [vmem:[#allocation2 + $0x30] sm:$0xff]  ;;  %vm105_vm2 = vcmask 261120  }
   0x8   :  { %49 = vmatpush.msra.mxu0 %v32_v1  ;;  %v27_v6 = vld [vmem:[%s212_s0] sm:$0x3]  ;;  %92 = vmatpush.msra.mxu1 %v70_v10  ;;  %v102_v12 = vld [vmem:[#allocation2 + $0x58] sm:$0xff]  ;;  %v101_v16 = vld [vmem:[#allocation2 + $0x50] sm:$0xff]  ;;  %s187_s0 = smov 32  }
   0x9   :  { %121 = vmatpush.msra.mxu2 %v102_v12  ;;  %v100_v17 = vld [vmem:[#allocation2 + $0x48] sm:$0xff]  ;;  %v99_v18 = vld [vmem:[#allocation2 + $0x40] sm:$0xff] }
   0xa   :  { %50 = vmatpush.msra.mxu0 %v31_v2  ;;  %93 = vmatpush.msra.mxu1 %v69_v11  ;;  %v154_v23 = vld [vmem:[#allocation2 + $0x2f] ss:$0 sm:$0xff] }
   0xb   :  { %122 = vmatpush.msra.mxu2 %v101_v16 }
   0xc   :  { %51 = vmatpush.msra.mxu0 %v30_v3 }
   0xd   :  { %123 = vmatpush.msra.mxu2 %v100_v17 }
   0xe   :  { %52 = vmatpush.msra.mxu0 %v29_v4 }
   0xf   :  { %124 = vmatpush.msra.mxu2 %v99_v18 }
  0x10   :  { %53 = vmatpush.msra.mxu0 %v28_v5 }
  0x11   :  { %144 = vmatmul.msk.f32.vlgmr.msra.gmra.mxu0 %vm34_vm0, %v27_v6 }
  0x8e   :  { %v55_v7 = vpop.f32.mrf.mxu0 }
  0x8f   :  { %71 = vrot.lane.b32.xlu1 %v55_v7, %s184_s17  ;;  %59 = vrot.lane.b32.xlu0 %v55_v7, %s185_s18 }
 0x101   :  { %v60_v8 = vpop.permute.xlu0 %59  ;;  %v72_v19 = vpop.permute.xlu1 %71 }
 0x102   :  { %v62_v9 = vmax.f32 %v55_v7, %v60_v8 }
 0x104   :  { %64 = vrot.lane.b32.xlu0 %v62_v9, %s186_s19 }
 0x176   :  { %v65_v13 = vpop.permute.xlu0 %64 }
 0x177   :  { %v67_v14 = vmax.f32 %v62_v9, %v65_v13 }
 0x179   :  { %v68_v15 = vmax.f32 %v67_v14, 0.0 }
 0x17b   :  { %145 = vmatmul.msk.f32.vlgmr.msra.gmra.mxu1 %vm74_vm1, %v68_v15 }
 0x1f8   :  { %v95_v20 = vpop.f32.mrf.mxu1 }
 0x1f9   :  { %v96_v21 = vadd.f32 %v95_v20, %v72_v19 }
 0x1fb   :  { %v98_v22 = vmax.f32 %v96_v21, 0.0  ;;  %130 = vrot.lane.b32.xlu1 %v96_v21, %s186_s19 }
 0x1fd   :  { %146 = vmatmul.msk.f32.vlgmr.msra.gmra.mxu2 %vm105_vm2, %v98_v22 }
 0x26d   :  { %v131_v26 = vpop.permute.xlu1 %130 }
 0x280   :  { %v126_v24 = vpop.f32.mrf.mxu2 }
 0x281   :  { %v127_v25 = vadd.f32 %v154_v23, %v126_v24 }
 0x283   :  { %134 = vrot.lane.b32.xlu2 %v127_v25, %s187_s0 }
 0x2dd   :  { %v135_v27 = vpop.permute.xlu2 %134 }
 0x2de   :  { %v137_v28 = vsel %vm105_vm2, %v131_v26, %v135_v27 }
 0x2df   :  { %138 = vst [vmem:[%s214_s2] sm:$0x3] %v137_v28 }
 0x2e0   :  { %143 = vsyncpa [#allocation3], 1 }

</bundles_post_ra>
